<compile_context>
chip_gen: v6e
topology: v6e:2x2x1
jax: 0.10.0
libtpu: 0.0.40
codegen_flags: <defaults>
</compile_context>

<pallas_src>
import jax
import jax.numpy as jnp
from jax.experimental import pallas as pl
from jax.experimental.pallas import tpu as pltpu


def _fused_kernel(w_ref, b_ref, x_ref, o_ref):
    # w_ref: (2, 2) f32 in SMEM   (PyTorch Linear weight, NOT transposed)
    # b_ref: (2,)   f32 in SMEM
    # x_ref: (2, 2) f32 in VMEM   (M=2 rows, K=2 in_features)
    # o_ref: (2, 2) out tile in VMEM
    x = x_ref[...].astype(jnp.float32)          # keep f32 compute (v5e has no bf16 VPU/EUP)

    # Scalar reads from SMEM -- these splat into VPU operands for free.
    w00 = w_ref[0, 0]
    w01 = w_ref[0, 1]
    w10 = w_ref[1, 0]
    w11 = w_ref[1, 1]
    b0 = b_ref[0]
    b1 = b_ref[1]

    # Per-output-column scalar vectors built with a pure-VPU select on a lane
    # iota (no weight/bias VMEM loads, no transpose, no concatenation).
    lane = jax.lax.broadcasted_iota(jnp.int32, x.shape, dimension=1)
    is_lane0 = lane == 0
    wT_k0 = jnp.where(is_lane0, w00, w10)       # row 0 of W^T: [w00, w10]
    wT_k1 = jnp.where(is_lane0, w01, w11)       # row 1 of W^T: [w01, w11]
    b_vec = jnp.where(is_lane0, b0, b1)         # [b0, b1]

    # t = x @ W^T, unrolled over K=2 as broadcast FMAs (VPU only, no MXU).
    t = x[:, 0:1] * wT_k0 + x[:, 1:2] * wT_k1   # (M, N) = (2, 2)

    # v2 = tanh(x @ W^T + b)
    v2 = jnp.tanh(t + b_vec)

    # threshold(v2, -0.8, 0.8): keep v2 where v2 > -0.8, else replace by 0.8
    x2 = jnp.where(v2 > -0.8, v2, jnp.float32(0.8))

    # v3 = x @ (2W)^T + b + x2  ==  2*t + b + x2   (exact algebraic rewrite)
    v3 = 2.0 * t + b_vec + x2

    o_ref[...] = (v2 + v3).astype(o_ref.dtype)


def model_forward(x1, weight, bias):
    # x1: (1, 2, H, W) with H*W == 2  (NCHW, as the PyTorch forward implies)
    n, c, h, w = x1.shape
    assert h * w == 2 and n * c * h * w == 4, "in_features of the Linear is 2"

    # Glue from the PyTorch forward: reshape to (1,1,2,H*W), flatten to (2,2).
    v1 = x1.reshape(1, 1, 2, h * w)
    x_mat = v1.reshape(2, h * w)                # (M=2, K=2)

    out_mat = pl.pallas_call(
        _fused_kernel,
        out_shape=jax.ShapeDtypeStruct((2, 2), x1.dtype),
        in_specs=[
            pl.BlockSpec(memory_space=pltpu.MemorySpace.SMEM),   # weight (2,2)
            pl.BlockSpec(memory_space=pltpu.MemorySpace.SMEM),   # bias   (2,)
            pl.BlockSpec(memory_space=pltpu.MemorySpace.VMEM),   # x      (2,2)
        ],
        out_specs=pl.BlockSpec(memory_space=pltpu.MemorySpace.VMEM),
    )(weight, bias, x_mat)

    return out_mat.reshape(1, 1, 2, 2)


def _reference(x1, weight, bias):
    # Pure-JAX reference mirroring the PyTorch forward.
    n, c, h, w = x1.shape
    v1 = x1.reshape(1, 1, 2, h * w)
    v2 = jnp.tanh(v1 @ weight.T + bias)
    x2 = jnp.where(v2 > -0.8, v2, 0.8)
    v3 = v1 @ (2.0 * weight).T + bias + x2
    return v2 + v3


if __name__ == "__main__":
    key = jax.random.PRNGKey(0)
    kx, kw, kb = jax.random.split(key, 3)

    # Input consistent with the forward: NCHW with C=2, H*W=2 -> (1, 2, 1, 2)
    x1 = jax.random.normal(kx, (1, 2, 1, 2), dtype=jnp.float32)

    # Deterministic Linear(2, 2) parameters (PyTorch-style uniform init bound)
    bound = 1.0 / jnp.sqrt(2.0)
    weight = jax.random.uniform(kw, (2, 2), jnp.float32, -bound, bound)
    bias = jax.random.uniform(kb, (2,), jnp.float32, -bound, bound)

    out = model_forward(x1, weight, bias)
    jax.block_until_ready(out)

    ref = _reference(x1, weight, bias)
    assert out.shape == (1, 1, 2, 2)
    assert jnp.allclose(out, ref, atol=1e-5, rtol=1e-5)

    print("KERNEL_OK")
</pallas_src>

<mosaic_0001>
module attributes {stable_mosaic.version = 11 : i64} {
  func.func @_fused_kernel(%arg0: memref<2x2xf32, #tpu.memory_space<smem>>, %arg1: memref<2xf32, #tpu.memory_space<smem>>, %arg2: memref<2x2xf32, #tpu.memory_space<vmem>>, %arg3: memref<2x2xf32, #tpu.memory_space<vmem>>) attributes {dimension_semantics = [], scalar_prefetch = 0 : i64, scratch_operands = 0 : i64, tpu.core_type = #tpu.core_type<tc>} {
    %c0 = arith.constant 0 : index
    %c0_0 = arith.constant 0 : index
    %0 = vector.load %arg2[%c0, %c0_0] : memref<2x2xf32, #tpu.memory_space<vmem>>, vector<2x2xf32>
    %c0_1 = arith.constant 0 : index
    %c0_2 = arith.constant 0 : index
    %1 = memref.load %arg0[%c0_1, %c0_2] : memref<2x2xf32, #tpu.memory_space<smem>>
    %c0_3 = arith.constant 0 : index
    %c1 = arith.constant 1 : index
    %2 = memref.load %arg0[%c0_3, %c1] : memref<2x2xf32, #tpu.memory_space<smem>>
    %c1_4 = arith.constant 1 : index
    %c0_5 = arith.constant 0 : index
    %3 = memref.load %arg0[%c1_4, %c0_5] : memref<2x2xf32, #tpu.memory_space<smem>>
    %c1_6 = arith.constant 1 : index
    %c1_7 = arith.constant 1 : index
    %4 = memref.load %arg0[%c1_6, %c1_7] : memref<2x2xf32, #tpu.memory_space<smem>>
    %c0_8 = arith.constant 0 : index
    %5 = memref.load %arg1[%c0_8] : memref<2xf32, #tpu.memory_space<smem>>
    %c1_9 = arith.constant 1 : index
    %6 = memref.load %arg1[%c1_9] : memref<2xf32, #tpu.memory_space<smem>>
    %7 = tpu.iota {dimensions = array<i32: 1>} : vector<2x2xi32>
    %c0_i32 = arith.constant 0 : i32
    %8 = vector.broadcast %c0_i32 : i32 to vector<2x2xi32>
    %9 = arith.cmpi eq, %7, %8 : vector<2x2xi32>
    %10 = vector.broadcast %1 : f32 to vector<2x2xf32>
    %11 = vector.broadcast %3 : f32 to vector<2x2xf32>
    %12 = arith.select %9, %10, %11 : vector<2x2xi1>, vector<2x2xf32>
    %13 = vector.broadcast %2 : f32 to vector<2x2xf32>
    %14 = vector.broadcast %4 : f32 to vector<2x2xf32>
    %15 = arith.select %9, %13, %14 : vector<2x2xi1>, vector<2x2xf32>
    %16 = vector.broadcast %5 : f32 to vector<2x2xf32>
    %17 = vector.broadcast %6 : f32 to vector<2x2xf32>
    %18 = arith.select %9, %16, %17 : vector<2x2xi1>, vector<2x2xf32>
    %19 = vector.extract_strided_slice %0 {offsets = [0, 0], sizes = [2, 1], strides = [1, 1]} : vector<2x2xf32> to vector<2x1xf32>
    %20 = vector.broadcast %19 : vector<2x1xf32> to vector<2x2xf32>
    %21 = arith.mulf %20, %12 : vector<2x2xf32>
    %22 = vector.extract_strided_slice %0 {offsets = [0, 1], sizes = [2, 1], strides = [1, 1]} : vector<2x2xf32> to vector<2x1xf32>
    %23 = vector.broadcast %22 : vector<2x1xf32> to vector<2x2xf32>
    %24 = arith.mulf %23, %15 : vector<2x2xf32>
    %25 = arith.addf %21, %24 : vector<2x2xf32>
    %26 = arith.addf %25, %18 : vector<2x2xf32>
    %27 = math.tanh %26 : vector<2x2xf32>
    %cst = arith.constant -8.000000e-01 : f32
    %28 = vector.broadcast %cst : f32 to vector<2x2xf32>
    %29 = arith.cmpf ogt, %27, %28 : vector<2x2xf32>
    %cst_10 = arith.constant 8.000000e-01 : f32
    %30 = vector.broadcast %cst_10 : f32 to vector<2x2xf32>
    %31 = arith.select %29, %27, %30 : vector<2x2xi1>, vector<2x2xf32>
    %cst_11 = arith.constant 2.000000e+00 : f32
    %32 = vector.broadcast %cst_11 : f32 to vector<2x2xf32>
    %33 = arith.mulf %32, %25 : vector<2x2xf32>
    %34 = arith.addf %33, %18 : vector<2x2xf32>
    %35 = arith.addf %34, %31 : vector<2x2xf32>
    %36 = arith.addf %27, %35 : vector<2x2xf32>
    %c0_12 = arith.constant 0 : index
    %c0_13 = arith.constant 0 : index
    %37 = vector.load %arg3[%c0_12, %c0_13] : memref<2x2xf32, #tpu.memory_space<vmem>>, vector<2x2xf32>
    tpu.vector_store %arg3[%c0_12, %c0_13], %36 {strides = array<i32>} : memref<2x2xf32, #tpu.memory_space<vmem>>, vector<2x2xf32>,
    return
  }
}

</mosaic_0001>

<bundles_post_ra>
// kernel: tpu_custom_call.1
= control target key start
LH: loop header
LB: loop body
LE: loop exit
PB: predicated region body
PF: predicated region fallthrough
CT: control target
= control target key end

     0   :  { %8 = vsyncpa [#allocation4], 0  ;;  %s191_s0 = inlined_call_operand.hbm [shape: f32[2,2], index: 0, kind: input, shape index: {}]   ;;  %s192_s1 = inlined_call_operand.vmem [shape: f32[2], index: 1, kind: input, shape index: {}]   ;;  %s193_s2 = inlined_call_operand.vmem [shape: f32[2,2], index: 2, kind: input, shape index: {}]   ;;  %s194_s3 = inlined_call_operand.hbm [shape: f32[2,2], index: 3, kind: output, shape index: {}]  }
   0x1   :  { %9 = vsyncpa [#allocation5], 0 }
   0x2   :  { %10 = vsyncpa [#allocation3], 0  ;;  %s25_s14 = sshll.u32 %s192_s1, 4  ;;  %s154_s15 = smov [#allocation2]   ;;  %s26_s14 = int_to_ptr.vmem [resolvable:$true] %s25_s14 }
   0x3   :  { %18 = dma.hbm_to_smem %s191_s0, 32, %s154_s15, [#allocation4]  }
   0x4   :  { %s116_s18 = scalar_lea.vmem %s26_s14, 16  ;;  %p121_p1 = scmp.lt.s32.totalorder %s26_s14, %s26_s14 }
   0x5   :  { %p117_p0 = scmp.ne.s32.totalorder %s26_s14, %s116_s18  ;;  %p122_p2 = scmp.lt.s32.totalorder %s116_s18, %s116_s18 }
   0x7   :  { %p123_p3 = por %p122_p2, %p121_p1 }
   0x9   :  { %p124_p4 = pnand %p123_p3, %p117_p0 }
   0xb   :  { %127 = shalt.err (!%p124_p4)
}
   0xc   :  { %s155_s19 = smov [#allocation6]  }
   0xd   :  { %28 = dma.vmem_to_smem %s26_s14, 16, %s155_s19, [#allocation5]  }
   0xe   :  { %148 = dma.done.wait [#allocation4], 32  }
   0xf   :  { %149 = vsyncadd [#allocation4], 4294967264 }
  0x10   :  { %150 = dma.done.wait [#allocation5], 16  }
  0x11   :  { %151 = vsyncadd [#allocation5], 4294967280 }
  0x12   :  { %37 = sfence }
  0x13   :  { %v38_v0 = vld [vmem:[%s193_s2] sm:$0x3]  ;;  %v156_v1 = vmov 0   ;;  %v157_v2 = vmov 1   ;;  %s39_s0 = sld [smem:[#allocation2]]  ;;  %v45_v3 = vlaneseq  ;;  %s158_s2 = smov [#allocation7]  }
  0x14   :  { %104 = vset.pattern.permute.xlu0 %v156_v1  ;;  %s96_s21 = sld [smem:[#allocation2 + $0x80]]  ;;  %s85_s26 = sshll.u32 %s158_s2, 4  ;;  %vm77_vm2 = vcmask 9216   ;;  %s86_s26 = int_to_ptr.vmem [resolvable:$true] %s85_s26 }
  0x15   :  { %59 = vperm.xlu0 %104, %v38_v0   ;;  %s95_s22 = sld [smem:[#allocation2 + $0x1]]  ;;  %v46_v4 = vand.u32 127, %v45_v3  ;;  %s128_s27 = scalar_lea.vmem %s86_s26, 32 }
  0x16   :  { %s97_s23 = sld [smem:[#allocation2 + $0x81]]  ;;  %p129_p5 = scmp.ne.s32.totalorder %s86_s26, %s128_s27 }
  0x17   :  { %s43_s24 = sld [smem:[#allocation6]]  ;;  %vm47_vm0 = vcmp.eq.s32.totalorder %v46_v4, 0  ;;  %p133_p6 = scmp.lt.s32.totalorder %s86_s26, %s86_s26 }
  0x18   :  { %s98_s25 = sld [smem:[#allocation6 + $0x1]]  ;;  %p134_p7 = scmp.lt.s32.totalorder %s128_s27, %s128_s27 }
  0x19   :  { %105 = vset.pattern.permute.xlu0 %v157_v2  ;;  %v48_v5 = vstv %s39_s0 }
  0x1a   :  { %64 = vperm.xlu0 %105, %v38_v0   ;;  %v49_v6 = vstv %s96_s21  ;;  %p135_p8 = por %p134_p7, %p133_p6 }
  0x1b   :  { %v51_v8 = vstv %s95_s22  ;;  %v50_v10 = vsel %vm47_vm0, %v48_v5, %v49_v6 }
  0x1c   :  { %v52_v9 = vstv %s97_s23  ;;  %p136_p9 = pnand %p135_p8, %p129_p5 }
  0x1d   :  { %v53_v11 = vsel %vm47_vm0, %v51_v8, %v52_v9  ;;  %v54_v12 = vstv %s43_s24 }
  0x1e   :  { %v55_v13 = vstv %s98_s25 }
  0x1f   :  { %v56_v17 = vsel %vm47_vm0, %v54_v12, %v55_v13 }
  0x90   :  { %v60_v7 = vpop.permute.xlu0 %59 }
  0x91   :  { %v62_v15 = vmul.f32 %v60_v7, %v50_v10 }
  0x95   :  { %v65_v14 = vpop.permute.xlu0 %64 }
  0x96   :  { %v67_v16 = vmul.f32 %v65_v14, %v53_v11 }
  0x98   :  { %v68_v18 = vadd.f32 %v67_v16, %v62_v15 }
  0x9a   :  { %v69_v19 = vadd.f32 %v68_v18, %v56_v17  ;;  %v73_v20 = vmul.f32 2.0, %v68_v18 }
  0x9c   :  { %106 = vtanh.f32 %v69_v19  ;;  %v74_v22 = vadd.f32 %v73_v20, %v56_v17 }
  0xa9   :  { %v107_v21 = vpop.eup %106 }
  0xaa   :  { %vm71_vm1 = vcmp.gt.f32.partialorder %v107_v21, -0.8 }
  0xab   :  { %v72_v23 = vsel %vm71_vm1, %v107_v21, 0.8 }
  0xac   :  { %v75_v24 = vadd.f32 %v74_v22, %v72_v23 }
  0xae   :  { %v76_v25 = vadd.f32 %v107_v21, %v75_v24 }
  0xb0   :  { %78 = vst.msk [vmem:[#allocation7] sm:$0x3] %vm77_vm2, %v76_v25 }
  0xb1   :  { %139 = shalt.err (!%p136_p9)
}
  0xb2   :  { %88 = dma.vmem_to_hbm [thread:$0]  %s86_s26, 32, %s194_s3, [#allocation3]  }
  0xb3   :  { %152 = dma.done.wait [#allocation3], 32  }
  0xb4   :  { %153 = vsyncadd [#allocation3], 4294967264 }
  0xb5   :  { %92 = vsyncpa [#allocation3], 1 }
  0xb6   :  { %93 = vsyncpa [#allocation4], 1 }
  0xb7   :  { %94 = vsyncpa [#allocation5], 1 }

</bundles_post_ra>
